<compile_context>
chip_gen: v5e
topology: v5e:2x2
jax: 0.10.0
libtpu: 0.0.40
codegen_flags: <defaults>
</compile_context>

<pallas_src>
import math
import functools

import jax
import jax.numpy as jnp
from jax import lax
from jax.experimental import pallas as pl
from jax.experimental.pallas import tpu as pltpu

GELU_C = math.sqrt(2.0 / math.pi)


def _round_up(x, m):
    return (x + m - 1) // m * m


def _dropout_keep_mask(seed_term_u32, row0, shape):
    """Bernoulli(0.5) keep mask from a cheap counter hash.

    Deterministic in (seed, global row, col) -> independent of tiling and of
    grid execution order (safe under 'parallel'). Pure vector int ops, so it
    runs both compiled on TPU and under the Pallas interpreter.
    """
    rows = (lax.broadcasted_iota(jnp.int32, shape, 0) + row0).astype(jnp.uint32)
    cols = lax.broadcasted_iota(jnp.int32, shape, 1).astype(jnp.uint32)
    h = rows * jnp.uint32(0x9E3779B1) + cols * jnp.uint32(0x85EBCA77) + seed_term_u32
    # single xorshift-multiply avalanche round: dropout only needs one good bit
    h = h ^ (h >> jnp.uint32(16))
    h = h * jnp.uint32(0x7FEB352D)
    h = h ^ (h >> jnp.uint32(15))
    return (h & jnp.uint32(1)) == jnp.uint32(1)


def _mlp_kernel(seed_ref, x_ref, w1_ref, b1_ref, w2_ref, b2_ref, o_ref, acc_ref,
                *, gelu_dtype):
    h_idx = pl.program_id(1)
    n_h = pl.num_programs(1)
    # NOTE: program_id / SMEM scalar reads must be hoisted OUT of pl.when bodies
    # (cond sub-jaxprs cannot lower program_id on the interpret fallback path).
    row0 = pl.program_id(0) * o_ref.shape[0]
    seed_term = seed_ref[0].astype(jnp.uint32) * jnp.uint32(0x27D4EB2F)

    # init accumulator at the first H tile of this batch tile
    @pl.when(h_idx == 0)
    def _():
        acc_ref[...] = jnp.zeros_like(acc_ref)

    # ---- c_fc slice: x(bf16) @ W1[:, h-tile] + b1[h-tile]  (MXU, f32 acc) ----
    h = jnp.dot(x_ref[...], w1_ref[...], preferred_element_type=jnp.float32)
    h = h + b1_ref[...].astype(jnp.float32)

    # ---- new_gelu (bf16 on v6e/v7x, f32 on v5e/unknown) ----
    hg = h.astype(gelu_dtype)
    half = jnp.asarray(0.5, gelu_dtype)
    one = jnp.asarray(1.0, gelu_dtype)
    c = jnp.asarray(GELU_C, gelu_dtype)
    k = jnp.asarray(0.044715, gelu_dtype)
    hg = half * hg * (one + jnp.tanh(c * (hg + k * (hg * hg * hg))))

    # ---- c_proj partial sum: accumulate gelu(h) @ W2[h-tile, :] ----
    acc_ref[...] += jnp.dot(hg.astype(jnp.bfloat16), w2_ref[...],
                            preferred_element_type=jnp.float32)

    # ---- finalize on last H tile: bias, dropout(p=0.5), lane-dense store ----
    @pl.when(h_idx == n_h - 1)
    def _():
        y = acc_ref[...] + b2_ref[...].astype(jnp.float32)
        keep = _dropout_keep_mask(seed_term, row0, y.shape)
        o_ref[...] = jnp.where(keep, y * 2.0, 0.0).astype(o_ref.dtype)


def select_config():
    """Generation-aware tile sizes / VMEM limit / GELU precision."""
    kind = ""
    try:
        kind = jax.devices()[0].device_kind.lower()
    except Exception:
        pass
    if "v6" in kind:  # v6e: 128 MiB VMEM, bf16 VPU/EUP, 918 TF/s -> big tiles
        return dict(tile_m=768, tile_h=1024, vmem=100 * 1024 * 1024,
                    gelu_bf16=True, two_tc=False)
    if "7" in kind and "tpu" in kind:  # v7x: 64 MiB VMEM/TC, 2 TCs/chip
        return dict(tile_m=384, tile_h=512, vmem=48 * 1024 * 1024,
                    gelu_bf16=True, two_tc=True)
    if "v5 lite" in kind or "v5e" in kind or "v5lite" in kind:  # v5e: no bf16 VPU/EUP
        return dict(tile_m=256, tile_h=512, vmem=64 * 1024 * 1024,
                    gelu_bf16=False, two_tc=False)
    # unknown chip / interpreter: conservative defaults
    return dict(tile_m=256, tile_h=512, vmem=64 * 1024 * 1024,
                gelu_bf16=False, two_tc=False)


def prepare_params(w1, b1, w2, b2, *, tile_h):
    """One-time host-side weight prep (pad to lane-dense tiles + bf16 cast).

    Hoisted out of the per-call hot path so the forward never re-streams the
    weight matrices through HBM just to pad/cast them.
    """
    D, H = w1.shape
    assert w2.shape == (H, D)
    tile_h = min(_round_up(tile_h, 128), _round_up(H, 128))
    D_pad = _round_up(D, 128)
    H_pad = _round_up(H, tile_h)
    w1p = jnp.pad(w1, ((0, D_pad - D), (0, H_pad - H))).astype(jnp.bfloat16)
    b1p = jnp.pad(b1.reshape(1, -1), ((0, 0), (0, H_pad - H))).astype(jnp.float32)
    w2p = jnp.pad(w2, ((0, H_pad - H), (0, D_pad - D))).astype(jnp.bfloat16)
    b2p = jnp.pad(b2.reshape(1, -1), ((0, 0), (0, D_pad - D))).astype(jnp.float32)
    params = (w1p, b1p, w2p, b2p)
    meta = dict(dim=D, hidden=H, d_pad=D_pad, h_pad=H_pad, tile_h=tile_h)
    return params, meta


@functools.partial(jax.jit,
                   static_argnames=("dim", "tm", "tile_h", "vmem_limit_bytes",
                                    "gelu_bf16"))
def _mlp_forward(x, w1p, b1p, w2p, b2p, seed, *, dim, tm, tile_h,
                 vmem_limit_bytes, gelu_bf16):
    M, D = x.shape
    assert D == dim
    D_pad, H_pad = w1p.shape
    assert H_pad % tile_h == 0
    M_pad = _round_up(M, tm)

    # Activations: pad ragged batch and cast to bf16 once (halves x DMA bytes
    # and removes the per-h-step in-kernel f32->bf16 relayout).
    xp = jnp.pad(x, ((0, M_pad - M), (0, D_pad - D))).astype(jnp.bfloat16)

    grid = (M_pad // tm, H_pad // tile_h)  # reduction (H) axis last

    grid_spec = pltpu.PrefetchScalarGridSpec(
        num_scalar_prefetch=1,                     # seed lives in SMEM
        grid=grid,
        in_specs=[
            pl.BlockSpec((tm, D_pad), lambda i, h, seed: (i, 0)),      # x (resident over h)
            pl.BlockSpec((D_pad, tile_h), lambda i, h, seed: (0, h)),  # W1 tile
            pl.BlockSpec((1, tile_h), lambda i, h, seed: (0, h)),      # b1 tile
            pl.BlockSpec((tile_h, D_pad), lambda i, h, seed: (h, 0)),  # W2 tile
            pl.BlockSpec((1, D_pad), lambda i, h, seed: (0, 0)),       # b2
        ],
        out_specs=pl.BlockSpec((tm, D_pad), lambda i, h, seed: (i, 0)),
        scratch_shapes=[pltpu.VMEM((tm, D_pad), jnp.float32)],         # f32 accumulator
    )

    gelu_dtype = jnp.bfloat16 if gelu_bf16 else jnp.float32
    kernel = functools.partial(_mlp_kernel, gelu_dtype=gelu_dtype)

    out = pl.pallas_call(
        kernel,
        out_shape=jax.ShapeDtypeStruct((M_pad, D_pad), x.dtype),
        grid_spec=grid_spec,
        compiler_params=pltpu.CompilerParams(
            dimension_semantics=("parallel", "arbitrary"),  # batch parallel, H reduction
            vmem_limit_bytes=vmem_limit_bytes,
        ),
    )(seed, xp, w1p, b1p, w2p, b2p)

    return out[:M, :D]


def mlp_apply(x, params, meta, seed, cfg):
    """Non-jitted wrapper: picks tm from the batch size / chip generation."""
    w1p, b1p, w2p, b2p = params
    M = x.shape[0]
    tm = min(_round_up(cfg["tile_m"], 16), _round_up(M, 16))
    # v7x has 2 TensorCores: make sure the parallel batch axis has >=2 steps
    if cfg["two_tc"] and M >= 32 and _round_up(M, tm) // tm < 2:
        tm = max(16, _round_up((M + 1) // 2, 16))
    return _mlp_forward(x, w1p, b1p, w2p, b2p, seed,
                        dim=meta["dim"], tm=tm, tile_h=meta["tile_h"],
                        vmem_limit_bytes=cfg["vmem"], gelu_bf16=cfg["gelu_bf16"])


def _reference_pre_dropout(x, w1, b1, w2, b2):
    """Pure-JAX reference of the fused math (before the dropout mask)."""
    h = jnp.dot(x.astype(jnp.bfloat16), w1.astype(jnp.bfloat16),
                preferred_element_type=jnp.float32) + b1
    h = 0.5 * h * (1.0 + jnp.tanh(GELU_C * (h + 0.044715 * (h * h * h))))
    y = jnp.dot(h.astype(jnp.bfloat16), w2.astype(jnp.bfloat16),
                preferred_element_type=jnp.float32) + b2
    return y


def init_params(key, dim):
    """Deterministic init mimicking torch.nn.Linear default (U[-1/sqrt(fan_in), +])."""
    hidden = 4 * dim
    k1, k2, k3, k4 = jax.random.split(key, 4)
    bound1 = 1.0 / math.sqrt(dim)
    bound2 = 1.0 / math.sqrt(hidden)
    # stored as (in_features, out_features)
    w1 = jax.random.uniform(k1, (dim, hidden), jnp.float32, -bound1, bound1)
    b1 = jax.random.uniform(k2, (1, hidden), jnp.float32, -bound1, bound1)
    w2 = jax.random.uniform(k3, (hidden, dim), jnp.float32, -bound2, bound2)
    b2 = jax.random.uniform(k4, (1, dim), jnp.float32, -bound2, bound2)
    return w1, b1, w2, b2


if __name__ == "__main__":
    dim = 128          # MLP(dim=128): hidden = 4 * dim = 512 (lane-dense, 128-multiple)
    batch = 16
    key = jax.random.PRNGKey(0)
    kx, kp = jax.random.split(key)

    x = jax.random.normal(kx, (batch, dim), dtype=jnp.float32)
    w1, b1, w2, b2 = init_params(kp, dim)
    seed = jnp.array([0], dtype=jnp.int32)

    cfg = select_config()
    params, meta = prepare_params(w1, b1, w2, b2, tile_h=cfg["tile_h"])  # once, off hot path

    out = mlp_apply(x, params, meta, seed, cfg)
    out = jax.block_until_ready(out)

    assert out.shape == (batch, dim) and out.dtype == jnp.float32
    assert bool(jnp.all(jnp.isfinite(out)))

    # Sanity checks: kept elements equal 2x the pre-dropout reference; keep rate ~0.5.
    y_ref = _reference_pre_dropout(x, w1, b1, w2, b2)
    kept = out != 0.0
    frac = float(jnp.mean(kept.astype(jnp.float32)))
    assert 0.3 < frac < 0.7, f"unexpected dropout keep fraction {frac}"
    ok = jnp.allclose(jnp.where(kept, out, 0.0),
                      jnp.where(kept, 2.0 * y_ref, 0.0),
                      rtol=2e-2, atol=2e-2)
    assert bool(ok), "kernel output mismatch vs pure-JAX reference"

    print("KERNEL_OK")
</pallas_src>

<mosaic_0001>
module attributes {stable_mosaic.version = 11 : i64} {
  func.func @_mlp_kernel(%arg0: i32, %arg1: i32, %arg2: memref<1xi32, #tpu.memory_space<smem>>, %arg3: memref<16x128xbf16, #tpu.memory_space<vmem>>, %arg4: memref<128x512xbf16, #tpu.memory_space<vmem>>, %arg5: memref<1x512xf32, #tpu.memory_space<vmem>>, %arg6: memref<512x128xbf16, #tpu.memory_space<vmem>>, %arg7: memref<1x128xf32, #tpu.memory_space<vmem>>, %arg8: memref<16x128xf32, #tpu.memory_space<vmem>>, %arg9: memref<16x128xf32, #tpu.memory_space<vmem>>) attributes {dimension_semantics = [#tpu.dimension_semantics<parallel>, #tpu.dimension_semantics<arbitrary>], iteration_bounds = array<i64: 1, 1>, scalar_prefetch = 1 : i64, scratch_operands = 1 : i64, tpu.core_type = #tpu.core_type<tc>, window_params = [{transform_indices = @transform_0, window_bounds = array<i64: 16, 128>}, {transform_indices = @transform_1, window_bounds = array<i64: 128, 512>}, {transform_indices = @transform_2, window_bounds = array<i64: 1, 512>}, {transform_indices = @transform_3, window_bounds = array<i64: 512, 128>}, {pipeline_mode = #tpu.pipeline_mode<synchronous>, transform_indices = @transform_4, window_bounds = array<i64: 1, 128>}, {transform_indices = @transform_5, window_bounds = array<i64: 16, 128>}]} {
    %c16_i32 = arith.constant 16 : i32
    %0 = arith.muli %arg0, %c16_i32 : i32
    %c0 = arith.constant 0 : index
    %1 = memref.load %arg2[%c0] : memref<1xi32, #tpu.memory_space<smem>>
    %c668265263_i32 = arith.constant 668265263 : i32
    %2 = arith.muli %1, %c668265263_i32 : i32
    %c0_i32 = arith.constant 0 : i32
    %3 = arith.cmpi eq, %arg1, %c0_i32 : i32
    %4 = arith.extui %3 : i1 to i32
    %c0_i32_0 = arith.constant 0 : i32
    %5 = arith.cmpi ne, %4, %c0_i32_0 : i32
    scf.if %5 {
      %cst_20 = arith.constant 0.000000e+00 : f32
      %34 = vector.broadcast %cst_20 : f32 to vector<16x128xf32>
      %c0_21 = arith.constant 0 : index
      %c0_22 = arith.constant 0 : index
      %35 = vector.load %arg9[%c0_21, %c0_22] : memref<16x128xf32, #tpu.memory_space<vmem>>, vector<16x128xf32>
      tpu.vector_store %arg9[%c0_21, %c0_22], %34 {strides = array<i32>} : memref<16x128xf32, #tpu.memory_space<vmem>>, vector<16x128xf32>,
    } else {
    }
    %c0_1 = arith.constant 0 : index
    %c0_2 = arith.constant 0 : index
    %6 = vector.load %arg3[%c0_1, %c0_2] : memref<16x128xbf16, #tpu.memory_space<vmem>>, vector<16x128xbf16>
    %c0_3 = arith.constant 0 : index
    %c0_4 = arith.constant 0 : index
    %7 = vector.load %arg4[%c0_3, %c0_4] : memref<128x512xbf16, #tpu.memory_space<vmem>>, vector<128x512xbf16>
    %cst = arith.constant dense<0.000000e+00> : vector<16x512xf32>
    %8 = tpu.matmul %6, %7, %cst {dimension_numbers = #tpu.dot_dimension_numbers<[1], [0], [0], [1], [0, 0, 1, 1], [], []>} : vector<16x128xbf16>, vector<128x512xbf16>, vector<16x512xf32> -> vector<16x512xf32>
    %c0_5 = arith.constant 0 : index
    %c0_6 = arith.constant 0 : index
    %9 = vector.load %arg5[%c0_5, %c0_6] : memref<1x512xf32, #tpu.memory_space<vmem>>, vector<1x512xf32>
    %10 = vector.broadcast %9 : vector<1x512xf32> to vector<16x512xf32>
    %11 = arith.addf %8, %10 : vector<16x512xf32>
    %cst_7 = arith.constant 5.000000e-01 : f32
    %12 = vector.broadcast %cst_7 : f32 to vector<16x512xf32>
    %13 = arith.mulf %12, %11 : vector<16x512xf32>
    %14 = arith.mulf %11, %11 : vector<16x512xf32>
    %15 = arith.mulf %14, %11 : vector<16x512xf32>
    %cst_8 = arith.constant 4.471500e-02 : f32
    %16 = vector.broadcast %cst_8 : f32 to vector<16x512xf32>
    %17 = arith.mulf %16, %15 : vector<16x512xf32>
    %18 = arith.addf %11, %17 : vector<16x512xf32>
    %cst_9 = arith.constant 0.797884583 : f32
    %19 = vector.broadcast %cst_9 : f32 to vector<16x512xf32>
    %20 = arith.mulf %19, %18 : vector<16x512xf32>
    %21 = math.tanh %20 : vector<16x512xf32>
    %cst_10 = arith.constant 1.000000e+00 : f32
    %22 = vector.broadcast %cst_10 : f32 to vector<16x512xf32>
    %23 = arith.addf %22, %21 : vector<16x512xf32>
    %24 = arith.mulf %13, %23 : vector<16x512xf32>
    %c0_11 = arith.constant 0 : index
    %c0_12 = arith.constant 0 : index
    %25 = vector.load %arg9[%c0_11, %c0_12] : memref<16x128xf32, #tpu.memory_space<vmem>>, vector<16x128xf32>
    %26 = arith.truncf %24 : vector<16x512xf32> to vector<16x512xbf16>
    %c0_13 = arith.constant 0 : index
    %c0_14 = arith.constant 0 : index
    %27 = vector.load %arg6[%c0_13, %c0_14] : memref<512x128xbf16, #tpu.memory_space<vmem>>, vector<512x128xbf16>
    %cst_15 = arith.constant dense<0.000000e+00> : vector<16x128xf32>
    %28 = tpu.matmul %26, %27, %cst_15 {dimension_numbers = #tpu.dot_dimension_numbers<[1], [0], [0], [1], [0, 0, 1, 1], [], []>} : vector<16x512xbf16>, vector<512x128xbf16>, vector<16x128xf32> -> vector<16x128xf32>
    %29 = arith.addf %25, %28 : vector<16x128xf32>
    %c0_16 = arith.constant 0 : index
    %c0_17 = arith.constant 0 : index
    %30 = vector.load %arg9[%c0_16, %c0_17] : memref<16x128xf32, #tpu.memory_space<vmem>>, vector<16x128xf32>
    tpu.vector_store %arg9[%c0_16, %c0_17], %29 {strides = array<i32>} : memref<16x128xf32, #tpu.memory_space<vmem>>, vector<16x128xf32>,
    %c0_i32_18 = arith.constant 0 : i32
    %31 = arith.cmpi eq, %arg1, %c0_i32_18 : i32
    %32 = arith.extui %31 : i1 to i32
    %c0_i32_19 = arith.constant 0 : i32
    %33 = arith.cmpi ne, %32, %c0_i32_19 : i32
    scf.if %33 {
      %c0_20 = arith.constant 0 : index
      %c0_21 = arith.constant 0 : index
      %34 = vector.load %arg9[%c0_20, %c0_21] : memref<16x128xf32, #tpu.memory_space<vmem>>, vector<16x128xf32>
      %c0_22 = arith.constant 0 : index
      %c0_23 = arith.constant 0 : index
      %35 = vector.load %arg7[%c0_22, %c0_23] : memref<1x128xf32, #tpu.memory_space<vmem>>, vector<1x128xf32>
      %36 = vector.broadcast %35 : vector<1x128xf32> to vector<16x128xf32>
      %37 = arith.addf %34, %36 : vector<16x128xf32>
      %38 = tpu.iota {dimensions = array<i32: 0>} : vector<16x128xi32>
      %39 = vector.broadcast %0 : i32 to vector<16x128xi32>
      %40 = arith.addi %38, %39 : vector<16x128xi32>
      %41 = tpu.iota {dimensions = array<i32: 1>} : vector<16x128xi32>
      %c-1640531535_i32 = arith.constant -1640531535 : i32
      %42 = vector.broadcast %c-1640531535_i32 : i32 to vector<16x128xi32>
      %43 = arith.muli %40, %42 : vector<16x128xi32>
      %c-2048144777_i32 = arith.constant -2048144777 : i32
      %44 = vector.broadcast %c-2048144777_i32 : i32 to vector<16x128xi32>
      %45 = arith.muli %41, %44 : vector<16x128xi32>
      %46 = arith.addi %43, %45 : vector<16x128xi32>
      %47 = vector.broadcast %2 : i32 to vector<16x128xi32>
      %48 = arith.addi %46, %47 : vector<16x128xi32>
      %c16_i32_24 = arith.constant 16 : i32
      %49 = vector.broadcast %c16_i32_24 : i32 to vector<16x128xi32>
      %50 = arith.shrui %48, %49 : vector<16x128xi32>
      %51 = arith.xori %48, %50 : vector<16x128xi32>
      %c2146121005_i32 = arith.constant 2146121005 : i32
      %52 = vector.broadcast %c2146121005_i32 : i32 to vector<16x128xi32>
      %53 = arith.muli %51, %52 : vector<16x128xi32>
      %c15_i32 = arith.constant 15 : i32
      %54 = vector.broadcast %c15_i32 : i32 to vector<16x128xi32>
      %55 = arith.shrui %53, %54 : vector<16x128xi32>
      %56 = arith.xori %53, %55 : vector<16x128xi32>
      %c1_i32 = arith.constant 1 : i32
      %57 = vector.broadcast %c1_i32 : i32 to vector<16x128xi32>
      %58 = arith.andi %56, %57 : vector<16x128xi32>
      %c1_i32_25 = arith.constant 1 : i32
      %59 = vector.broadcast %c1_i32_25 : i32 to vector<16x128xi32>
      %60 = arith.cmpi eq, %58, %59 : vector<16x128xi32>
      %cst_26 = arith.constant 2.000000e+00 : f32
      %61 = vector.broadcast %cst_26 : f32 to vector<16x128xf32>
      %62 = arith.mulf %37, %61 : vector<16x128xf32>
      %cst_27 = arith.constant 0.000000e+00 : f32
      %63 = vector.broadcast %cst_27 : f32 to vector<16x128xf32>
      %64 = arith.select %60, %62, %63 : vector<16x128xi1>, vector<16x128xf32>
      %c0_28 = arith.constant 0 : index
      %c0_29 = arith.constant 0 : index
      %65 = vector.load %arg8[%c0_28, %c0_29] : memref<16x128xf32, #tpu.memory_space<vmem>>, vector<16x128xf32>
      tpu.vector_store %arg8[%c0_28, %c0_29], %64 {strides = array<i32>} : memref<16x128xf32, #tpu.memory_space<vmem>>, vector<16x128xf32>,
    } else {
    }
    return
  }
  func.func @transform_0(%arg0: i32, %arg1: i32, %arg2: memref<1xi32, #tpu.memory_space<smem>>) -> (i32, i32) {
    %c0_i32 = arith.constant 0 : i32
    %c0_i32_0 = arith.constant 0 : i32
    return %arg0, %c0_i32 : i32, i32
  }
  func.func @transform_1(%arg0: i32, %arg1: i32, %arg2: memref<1xi32, #tpu.memory_space<smem>>) -> (i32, i32) {
    %c0_i32 = arith.constant 0 : i32
    %c0_i32_0 = arith.constant 0 : i32
    return %c0_i32, %arg1 : i32, i32
  }
  func.func @transform_2(%arg0: i32, %arg1: i32, %arg2: memref<1xi32, #tpu.memory_space<smem>>) -> (i32, i32) {
    %c0_i32 = arith.constant 0 : i32
    %c0_i32_0 = arith.constant 0 : i32
    return %c0_i32, %arg1 : i32, i32
  }
  func.func @transform_3(%arg0: i32, %arg1: i32, %arg2: memref<1xi32, #tpu.memory_space<smem>>) -> (i32, i32) {
    %c0_i32 = arith.constant 0 : i32
    %c0_i32_0 = arith.constant 0 : i32
    return %arg1, %c0_i32 : i32, i32
  }
  func.func @transform_4(%arg0: i32, %arg1: i32, %arg2: memref<1xi32, #tpu.memory_space<smem>>) -> (i32, i32) {
    %c0_i32 = arith.constant 0 : i32
    %c0_i32_0 = arith.constant 0 : i32
    %c0_i32_1 = arith.constant 0 : i32
    return %c0_i32, %c0_i32_0 : i32, i32
  }
  func.func @transform_5(%arg0: i32, %arg1: i32, %arg2: memref<1xi32, #tpu.memory_space<smem>>) -> (i32, i32) {
    %c0_i32 = arith.constant 0 : i32
    %c0_i32_0 = arith.constant 0 : i32
    return %arg0, %c0_i32 : i32, i32
  }
}

</mosaic_0001>

<bundles_post_ra>
// kernel: _mlp_forward.1
= control target key start
LH: loop header
LB: loop body
LE: loop exit
PB: predicated region body
PF: predicated region fallthrough
CT: control target
= control target key end

     0   :  { %12 = vsyncpa [#allocation6], 0  ;;  %s1319_s0 = inlined_call_operand.<no memory space> [shape: s32[1], index: 0, kind: input, shape index: {}]   ;;  %s1320_s1 = inlined_call_operand.vmem [shape: bf16[16,128], index: 1, kind: input, shape index: {}]   ;;  %s1321_s2 = inlined_call_operand.hbm [shape: bf16[128,512], index: 2, kind: input, shape index: {}]   ;;  %s1322_s3 = inlined_call_operand.vmem [shape: f32[1,512], index: 3, kind: input, shape index: {}]   ;;  %s1323_s4 = inlined_call_operand.hbm [shape: bf16[512,128], index: 4, kind: input, shape index: {}]   ;;  %s1324_s5 = inlined_call_operand.vmem [shape: f32[1,128], index: 5, kind: input, shape index: {}]   ;;  %s1325_s6 = inlined_call_operand.hbm [shape: f32[16,128], index: 6, kind: output, shape index: {}]  }
   0x1   :  { %13 = vsyncpa [#allocation9], 0 }
   0x2   :  { %14 = vsyncpa [#allocation7], 0  ;;  %s21_s23 = sshll.u32 %s1321_s2, 4  ;;  %s1220_s24 = smov [#allocation5]   ;;  %s22_s23 = int_to_ptr.hbm [resolvable:$true] %s21_s23 }
   0x3   :  { %s23_s25 = sshll.u32 %s1220_s24, 4  ;;  %s36_s28 = sshll.u32 %s1323_s4, 4  ;;  %s24_s25 = int_to_ptr.vmem [resolvable:$true] %s23_s25  ;;  %s37_s28 = int_to_ptr.hbm [resolvable:$true] %s36_s28 }
   0x4   :  { %s1221_s29 = smov 256   ;;  %s1222_s30 = smov 16  }
   0x5   :  { %29 = dma.hbm_to_vmem [thread:$0]  %s22_s23, 4096, %s24_s25, [#allocation6], %s1221_s29, %s1221_s29, %s1222_s30  }
   0x6   :  { %s1223_s7 = smov [#allocation8]   ;;  %s1224_s9 = smov 64  }
   0x7   :  { %s38_s8 = sshll.u32 %s1223_s7, 4  ;;  %s1225_s10 = smov 4   ;;  %s39_s8 = int_to_ptr.vmem [resolvable:$true] %s38_s8 }
   0x8   :  { %44 = dma.hbm_to_vmem [thread:$0]  %s37_s28, 4096, %s39_s8, [#allocation9], %s1224_s9, %s1224_s9, %s1225_s10  }
   0x9   :  { %1214 = dma.done.wait [#allocation6], 4096  }
   0xa   :  { %1215 = vsyncadd [#allocation6], 4294963200 }
   0xb   :  { %1216 = dma.done.wait [#allocation9], 4096  }
   0xc   :  { %1217 = vsyncadd [#allocation9], 4294963200  ;;  %v909_v0 = vld [vmem:[#allocation5 + $0xe0] sm:$0xf]  ;;  %v1082_v1 = vld [vmem:[#allocation5 + $0xec] sm:$0xf0] }
   0xd   :  { %v1080_v2 = vld [vmem:[#allocation5 + $0xe4] sm:$0xf]  ;;  %v910_v3 = vor.u32 %v1082_v1, %v909_v0  ;;  %v911_v4 = vld [vmem:[#allocation5 + $0xf0] sm:$0xf0]  ;;  %v917_v5 = vld [vmem:[#allocation5 + $0xe8] sm:$0xf] }
   0xe   :  { %v1083_v6 = vld [vmem:[#allocation5 + $0xf4] sm:$0xf0]  ;;  %v914_v7 = vor.u32 %v1080_v2, %v911_v4  ;;  %v1081_v9 = vld [vmem:[#allocation5 + $0xec] sm:$0xf]  ;;  %v919_v10 = vld [vmem:[#allocation5 + $0xf8] sm:$0xf0] }
   0xf   :  { %v918_v8 = vor.u32 %v1083_v6, %v917_v5  ;;  %v893_v11 = vld [vmem:[#allocation5 + $0xc0] sm:$0xf]  ;;  %274 = vmatpush.bf16.msra.mxu0 %v910_v3  ;;  %v922_v12 = vor.u32 %v1081_v9, %v919_v10  ;;  %v1078_v13 = vld [vmem:[#allocation5 + $0xcc] sm:$0xf0]  ;;  %v1076_v14 = vld [vmem:[#allocation5 + $0xc4] sm:$0xf] }
  0x10   :  { %v895_v15 = vld [vmem:[#allocation5 + $0xd0] sm:$0xf0]  ;;  %288 = vmatpush.bf16.msra.mxu1 %v914_v7  ;;  %v894_v16 = vor.u32 %v1078_v13, %v893_v11  ;;  %v901_v18 = vld [vmem:[#allocation5 + $0xc8] sm:$0xf]  ;;  %v1079_v19 = vld [vmem:[#allocation5 + $0xd4] sm:$0xf0] }
  0x11   :  { %302 = vmatpush.bf16.msra.mxu2 %v918_v8  ;;  %v898_v17 = vor.u32 %v1076_v14, %v895_v15  ;;  %v1077_v20 = vld [vmem:[#allocation5 + $0xcc] sm:$0xf]  ;;  %316 = vmatpush.bf16.msra.mxu3 %v922_v12  ;;  %v902_v21 = vor.u32 %v1079_v19, %v901_v18  ;;  %v903_v22 = vld [vmem:[#allocation5 + $0xd8] sm:$0xf0]  ;;  %v877_v23 = vld [vmem:[#allocation5 + $0xa0] sm:$0xf] }
  0x12   :  { %v1074_v24 = vld [vmem:[#allocation5 + $0xac] sm:$0xf0]  ;;  %v906_v25 = vor.u32 %v1077_v20, %v903_v22  ;;  %v1072_v26 = vld [vmem:[#allocation5 + $0xa4] sm:$0xf]  ;;  %v879_v27 = vld [vmem:[#allocation5 + $0xb0] sm:$0xf0] }
  0x13   :  { %v885_v28 = vld [vmem:[#allocation5 + $0xa8] sm:$0xf]  ;;  %275 = vmatpush.bf16.msra.mxu0 %v894_v16  ;;  %v878_v29 = vor.u32 %v1074_v24, %v877_v23  ;;  %v1075_v30 = vld [vmem:[#allocation5 + $0xb4] sm:$0xf0]  ;;  %v1073_v31 = vld [vmem:[#allocation5 + $0xac] sm:$0xf]  ;;  %v882_v33 = vor.u32 %v1072_v26, %v879_v27 }
  0x14   :  { %v887_v32 = vld [vmem:[#allocation5 + $0xb8] sm:$0xf0]  ;;  %289 = vmatpush.bf16.msra.mxu1 %v898_v17  ;;  %v886_v34 = vor.u32 %v1075_v30, %v885_v28  ;;  %v861_v35 = vld [vmem:[#allocation5 + $0x80] sm:$0xf]  ;;  %v1070_v36 = vld [vmem:[#allocation5 + $0x8c] sm:$0xf0] }
  0x15   :  { %303 = vmatpush.bf16.msra.mxu2 %v902_v21  ;;  %v1068_v37 = vld [vmem:[#allocation5 + $0x84] sm:$0xf]  ;;  %317 = vmatpush.bf16.msra.mxu3 %v906_v25  ;;  %v890_v38 = vor.u32 %v1073_v31, %v887_v32  ;;  %v863_v39 = vld [vmem:[#allocation5 + $0x90] sm:$0xf0]  ;;  %v869_v40 = vld [vmem:[#allocation5 + $0x88] sm:$0xf]  ;;  %v862_v44 = vor.u32 %v1070_v36, %v861_v35 }
  0x16   :  { %v1071_v41 = vld [vmem:[#allocation5 + $0x94] sm:$0xf0]  ;;  %v1069_v42 = vld [vmem:[#allocation5 + $0x8c] sm:$0xf]  ;;  %v871_v43 = vld [vmem:[#allocation5 + $0x98] sm:$0xf0]  ;;  %v866_v45 = vor.u32 %v1068_v37, %v863_v39 }
  0x17   :  { %276 = vmatpush.bf16.msra.mxu0 %v878_v29  ;;  %v870_v46 = vor.u32 %v1071_v41, %v869_v40  ;;  %v845_v47 = vld [vmem:[#allocation5 + $0x60] sm:$0xf]  ;;  %v1066_v48 = vld [vmem:[#allocation5 + $0x6c] sm:$0xf0]  ;;  %v1064_v49 = vld [vmem:[#allocation5 + $0x64] sm:$0xf]  ;;  %v874_v50 = vor.u32 %v1069_v42, %v871_v43 }
  0x18   :  { %290 = vmatpush.bf16.msra.mxu1 %v882_v33  ;;  %v847_v51 = vld [vmem:[#allocation5 + $0x70] sm:$0xf0]  ;;  %v853_v52 = vld [vmem:[#allocation5 + $0x68] sm:$0xf]  ;;  %v1067_v53 = vld [vmem:[#allocation5 + $0x74] sm:$0xf0]  ;;  %v846_v56 = vor.u32 %v1066_v48, %v845_v47 }
  0x19   :  { %304 = vmatpush.bf16.msra.mxu2 %v886_v34  ;;  %318 = vmatpush.bf16.msra.mxu3 %v890_v38  ;;  %v1065_v54 = vld [vmem:[#allocation5 + $0x6c] sm:$0xf]  ;;  %v855_v55 = vld [vmem:[#allocation5 + $0x78] sm:$0xf0]  ;;  %v850_v57 = vor.u32 %v1064_v49, %v847_v51  ;;  %v854_v58 = vor.u32 %v1067_v53, %v853_v52  ;;  %v829_v59 = vld [vmem:[#allocation5 + $0x40] sm:$0xf] }
  0x1a   :  { %v1062_v60 = vld [vmem:[#allocation5 + $0x4c] sm:$0xf0]  ;;  %v1060_v61 = vld [vmem:[#allocation5 + $0x44] sm:$0xf]  ;;  %v858_v62 = vor.u32 %v1065_v54, %v855_v55  ;;  %v831_v63 = vld [vmem:[#allocation5 + $0x50] sm:$0xf0] }
  0x1b   :  { %277 = vmatpush.bf16.msra.mxu0 %v862_v44  ;;  %v837_v0 = vld [vmem:[#allocation5 + $0x48] sm:$0xf]  ;;  %v1063_v1 = vld [vmem:[#allocation5 + $0x54] sm:$0xf0]  ;;  %v1061_v2 = vld [vmem:[#allocation5 + $0x4c] sm:$0xf]  ;;  %v830_v4 = vor.u32 %v1062_v60, %v829_v59  ;;  %v834_v5 = vor.u32 %v1060_v61, %v831_v63 }
  0x1c   :  { %291 = vmatpush.bf16.msra.mxu1 %v866_v45  ;;  %v839_v3 = vld [vmem:[#allocation5 + $0x58] sm:$0xf0]  ;;  %v838_v6 = vor.u32 %v1063_v1, %v837_v0  ;;  %v813_v7 = vld [vmem:[#allocation5 + $0x20] sm:$0xf]  ;;  %v1058_v8 = vld [vmem:[#allocation5 + $0x2c] sm:$0xf0] }
  0x1d   :  { %305 = vmatpush.bf16.msra.mxu2 %v870_v46  ;;  %319 = vmatpush.bf16.msra.mxu3 %v874_v50  ;;  %v1056_v9 = vld [vmem:[#allocation5 + $0x24] sm:$0xf]  ;;  %v842_v10 = vor.u32 %v1061_v2, %v839_v3  ;;  %v815_v11 = vld [vmem:[#allocation5 + $0x30] sm:$0xf0]  ;;  %v821_v12 = vld [vmem:[#allocation5 + $0x28] sm:$0xf]  ;;  %v814_v16 = vor.u32 %v1058_v8, %v813_v7 }
  0x1e   :  { %v1059_v13 = vld [vmem:[#allocation5 + $0x34] sm:$0xf0]  ;;  %v1057_v14 = vld [vmem:[#allocation5 + $0x2c] sm:$0xf]  ;;  %v823_v15 = vld [vmem:[#allocation5 + $0x38] sm:$0xf0]  ;;  %v818_v17 = vor.u32 %v1056_v9, %v815_v11 }
  0x1f   :  { %278 = vmatpush.bf16.msra.mxu0 %v846_v56  ;;  %v822_v18 = vor.u32 %v1059_v13, %v821_v12  ;;  %v797_v19 = vld [vmem:[#allocation5] sm:$0xf]  ;;  %v1054_v20 = vld [vmem:[#allocation5 + $0xc] sm:$0xf0]  ;;  %v1052_v21 = vld [vmem:[#allocation5 + $0x4] sm:$0xf]  ;;  %v826_v22 = vor.u32 %v1057_v14, %v823_v15 }
  0x20   :  { %292 = vmatpush.bf16.msra.mxu1 %v850_v57  ;;  %v799_v23 = vld [vmem:[#allocation5 + $0x10] sm:$0xf0]  ;;  %v805_v24 = vld [vmem:[#allocation5 + $0x8] sm:$0xf]  ;;  %v1055_v25 = vld [vmem:[#allocation5 + $0x14] sm:$0xf0]  ;;  %v798_v28 = vor.u32 %v1054_v20, %v797_v19 }
  0x21   :  { %306 = vmatpush.bf16.msra.mxu2 %v854_v58  ;;  %320 = vmatpush.bf16.msra.mxu3 %v858_v62  ;;  %v1053_v26 = vld [vmem:[#allocation5 + $0xc] sm:$0xf]  ;;  %v807_v27 = vld [vmem:[#allocation5 + $0x18] sm:$0xf0]  ;;  %v802_v29 = vor.u32 %v1052_v21, %v799_v23  ;;  %v806_v30 = vor.u32 %v1055_v25, %v805_v24  ;;  %v1051_v32 = vld [vmem:[%s1320_s1] sm:$0xff]  ;;  %s1226_s15 = smov [#allocation10]  }
  0x22   :  { %v810_v31 = vor.u32 %v1053_v26, %v807_v27  ;;  %v1091_v33 = vld [vmem:[#allocation8 + $0x38] sm:$0xff]  ;;  %v1090_v35 = vld [vmem:[#allocation8 + $0x30] sm:$0xff]  ;;  %v1089_v39 = vld [vmem:[#allocation8 + $0x28] sm:$0xff]  ;;  %s57_s13 = smul.u32 668265263, %s1319_s0  ;;  %s775_s16 = sshll.u32 %s1226_s15, 4  ;;  %s776_s16 = int_to_ptr.vmem [resolvable:$true] %s775_s16 }
  0x23   :  { %279 = vmatpush.bf16.msra.mxu0 %v830_v4  ;;  %v1099_v34 = vld [vmem:[#allocation8 + $0x78] sm:$0xff]  ;;  %v1098_v36 = vld [vmem:[#allocation8 + $0x70] sm:$0xff]  ;;  %v1097_v40 = vld [vmem:[#allocation8 + $0x68] sm:$0xff]  ;;  %s777_s18 = sshll.u32 %s1325_s6, 4  ;;  %s1227_s19 = smov 128   ;;  %s778_s18 = int_to_ptr.hbm [resolvable:$true] %s777_s18 }
  0x24   :  { %293 = vmatpush.bf16.msra.mxu1 %v834_v5  ;;  %v1107_v37 = vld [vmem:[#allocation8 + $0xb8] sm:$0xff]  ;;  %v1106_v41 = vld [vmem:[#allocation8 + $0xb0] sm:$0xff]  ;;  %v1088_v43 = vld [vmem:[#allocation8 + $0x20] sm:$0xff]  ;;  %s1228_s20 = smov 8  }
  0x25   :  { %307 = vmatpush.bf16.msra.mxu2 %v838_v6  ;;  %321 = vmatpush.bf16.msra.mxu3 %v842_v10  ;;  %v1115_v38 = vld [vmem:[#allocation8 + $0xf8] sm:$0xff]  ;;  %v1114_v42 = vld [vmem:[#allocation8 + $0xf0] sm:$0xff]  ;;  %v1096_v44 = vld [vmem:[#allocation8 + $0x60] sm:$0xff] }
  0x26   :  { %v1105_v45 = vld [vmem:[#allocation8 + $0xa8] sm:$0xff]  ;;  %v1087_v47 = vld [vmem:[#allocation8 + $0x18] sm:$0xff]  ;;  %v1104_v49 = vld [vmem:[#allocation8 + $0xa0] sm:$0xff] }
  0x27   :  { %280 = vmatpush.bf16.msra.mxu0 %v814_v16  ;;  %v1113_v46 = vld [vmem:[#allocation8 + $0xe8] sm:$0xff]  ;;  %v1095_v48 = vld [vmem:[#allocation8 + $0x58] sm:$0xff]  ;;  %v1112_v50 = vld [vmem:[#allocation8 + $0xe0] sm:$0xff] }
  0x28   :  { %294 = vmatpush.bf16.msra.mxu1 %v818_v17  ;;  %v1086_v51 = vld [vmem:[#allocation8 + $0x10] sm:$0xff]  ;;  %v1103_v53 = vld [vmem:[#allocation8 + $0x98] sm:$0xff]  ;;  %v1276_v55 = vld [vmem:[%s1322_s3] sm:$0xf] }
  0x29   :  { %308 = vmatpush.bf16.msra.mxu2 %v822_v18  ;;  %322 = vmatpush.bf16.msra.mxu3 %v826_v22  ;;  %v1094_v52 = vld [vmem:[#allocation8 + $0x50] sm:$0xff]  ;;  %v1111_v54 = vld [vmem:[#allocation8 + $0xd8] sm:$0xff]  ;;  %v1085_v56 = vld [vmem:[#allocation8 + $0x8] sm:$0xff]  ;;  %v100_v58 = vperm.slane %v1276_v55, 0  ;;  %v101_v62 = vperm.slane %v1276_v55, 1  ;;  %v102_v8 = vperm.slane %v1276_v55, 2 }
  0x2a   :  { %v1093_v57 = vld [vmem:[#allocation8 + $0x48] sm:$0xff]  ;;  %v1102_v59 = vld [vmem:[#allocation8 + $0x90] sm:$0xff]  ;;  %v1084_v61 = vld [vmem:[#allocation8] sm:$0xff]  ;;  %v103_v12 = vperm.slane %v1276_v55, 3 }
  0x2b   :  { %281 = vmatpush.bf16.msra.mxu0 %v798_v28  ;;  %v1110_v60 = vld [vmem:[#allocation8 + $0xd0] sm:$0xff]  ;;  %v1092_v63 = vld [vmem:[#allocation8 + $0x40] sm:$0xff]  ;;  %v1101_v0 = vld [vmem:[#allocation8 + $0x88] sm:$0xff] }
  0x2c   :  { %295 = vmatpush.bf16.msra.mxu1 %v802_v29  ;;  %v1109_v1 = vld [vmem:[#allocation8 + $0xc8] sm:$0xff]  ;;  %v1100_v9 = vld [vmem:[#allocation8 + $0x80] sm:$0xff] }
  0x2d   :  { %309 = vmatpush.bf16.msra.mxu2 %v806_v30  ;;  %323 = vmatpush.bf16.msra.mxu3 %v810_v31  ;;  %v1108_v10 = vld [vmem:[#allocation8 + $0xc0] sm:$0xff] }
  0x2e   :  { %282 = vmatmul.bf16.vlgmr.msra.gmra.mxu0 %v1051_v32 }
  0x2f   :  { %296 = vmatmul.bf16.vlgmr.msra.gmra.mxu1 %v1051_v32  ;;  %664 = vmatpush.bf16.msrb.mxu0 %v1091_v33 }
  0x30   :  { %310 = vmatmul.bf16.vlgmr.msra.gmra.mxu2 %v1051_v32  ;;  %324 = vmatmul.bf16.vlgmr.msra.gmra.mxu3 %v1051_v32 }
  0x31   :  { %678 = vmatpush.bf16.msrb.mxu1 %v1099_v34  ;;  %692 = vmatpush.bf16.msrb.mxu2 %v1107_v37 }
  0x32   :  { %706 = vmatpush.bf16.msrb.mxu3 %v1115_v38 }
  0x33   :  { %665 = vmatpush.bf16.msrb.mxu0 %v1090_v35 }
  0x35   :  { %679 = vmatpush.bf16.msrb.mxu1 %v1098_v36  ;;  %693 = vmatpush.bf16.msrb.mxu2 %v1106_v41 }
  0x36   :  { %707 = vmatpush.bf16.msrb.mxu3 %v1114_v42 }
  0x37   :  { %666 = vmatpush.bf16.msrb.mxu0 %v1089_v39 }
  0x39   :  { %680 = vmatpush.bf16.msrb.mxu1 %v1097_v40  ;;  %694 = vmatpush.bf16.msrb.mxu2 %v1105_v45 }
  0x3a   :  { %708 = vmatpush.bf16.msrb.mxu3 %v1113_v46 }
  0x3b   :  { %667 = vmatpush.bf16.msrb.mxu0 %v1088_v43 }
  0x3d   :  { %681 = vmatpush.bf16.msrb.mxu1 %v1096_v44  ;;  %695 = vmatpush.bf16.msrb.mxu2 %v1104_v49 }
  0x3e   :  { %709 = vmatpush.bf16.msrb.mxu3 %v1112_v50 }
  0x3f   :  { %668 = vmatpush.bf16.msrb.mxu0 %v1087_v47 }
  0x41   :  { %682 = vmatpush.bf16.msrb.mxu1 %v1095_v48  ;;  %696 = vmatpush.bf16.msrb.mxu2 %v1103_v53 }
  0x42   :  { %710 = vmatpush.bf16.msrb.mxu3 %v1111_v54 }
  0x43   :  { %669 = vmatpush.bf16.msrb.mxu0 %v1086_v51 }
  0x45   :  { %683 = vmatpush.bf16.msrb.mxu1 %v1094_v52  ;;  %697 = vmatpush.bf16.msrb.mxu2 %v1102_v59 }
  0x46   :  { %711 = vmatpush.bf16.msrb.mxu3 %v1110_v60 }
  0x47   :  { %670 = vmatpush.bf16.msrb.mxu0 %v1085_v56 }
  0x49   :  { %684 = vmatpush.bf16.msrb.mxu1 %v1093_v57  ;;  %698 = vmatpush.bf16.msrb.mxu2 %v1101_v0 }
  0x4a   :  { %712 = vmatpush.bf16.msrb.mxu3 %v1109_v1 }
  0x4b   :  { %671 = vmatpush.bf16.msrb.mxu0 %v1084_v61 }
  0x4d   :  { %685 = vmatpush.bf16.msrb.mxu1 %v1092_v63  ;;  %699 = vmatpush.bf16.msrb.mxu2 %v1100_v9 }
  0x4e   :  { %713 = vmatpush.bf16.msrb.mxu3 %v1108_v10 }
  0xab   :  { %v283_v2 = vpop.f32.mrf.mxu0 }
  0xac   :  { %v1280_v3 = vadd.f32 %v283_v2, %v100_v58  ;;  %v297_v4 = vpop.f32.mrf.mxu1 }
  0xad   :  { %v1282_v5 = vadd.f32 %v297_v4, %v101_v62 }
  0xae   :  { %v338_v6 = vmul.f32 %v1280_v3, %v1280_v3 }
  0xaf   :  { %v339_v7 = vmul.f32 %v1282_v5, %v1282_v5  ;;  %v331_v10 = vmul.f32 0.5, %v1282_v5 }
  0xb0   :  { %v346_v11 = vmul.f32 %v338_v6, %v1280_v3  ;;  %v330_v6 = vmul.f32 0.5, %v1280_v3 }
  0xb1   :  { %v347_v13 = vmul.f32 %v339_v7, %v1282_v5 }
  0xb2   :  { %v354_v14 = vmul.f32 0.044715, %v346_v11 }
  0xb3   :  { %v311_v15 = vpop.f32.mrf.mxu2  ;;  %v355_v16 = vmul.f32 0.044715, %v347_v13  ;;  %v325_v18 = vpop.f32.mrf.mxu3 }
  0xb4   :  { %v1292_v17 = vadd.f32 %v311_v15, %v102_v8  ;;  %v285_v19 = vpop.f32.mrf.mxu0  ;;  %v1294_v20 = vadd.f32 %v325_v18, %v103_v12  ;;  %v299_v22 = vpop.f32.mrf.mxu1  ;;  %v362_v23 = vadd.f32 %v354_v14, %v1280_v3 }
  0xb5   :  { %v286_v21 = vadd.f32 %v285_v19, %v100_v58  ;;  %v300_v25 = vadd.f32 %v299_v22, %v101_v62  ;;  %v363_v26 = vadd.f32 %v355_v16, %v1282_v5 }
  0xb6   :  { %v340_v24 = vmul.f32 %v1292_v17, %v1292_v17  ;;  %v341_v27 = vmul.f32 %v1294_v20, %v1294_v20  ;;  %v370_v33 = vmul.f32 0.7978846, %v362_v23  ;;  %v332_v3 = vmul.f32 0.5, %v1292_v17 }
  0xb7   :  { %v342_v28 = vmul.f32 %v286_v21, %v286_v21  ;;  %v343_v30 = vmul.f32 %v300_v25, %v300_v25  ;;  %v371_v36 = vmul.f32 0.7978846, %v363_v26  ;;  %v334_v7 = vmul.f32 0.5, %v286_v21 }
  0xb8   :  { %v348_v29 = vmul.f32 %v340_v24, %v1292_v17  ;;  %v349_v31 = vmul.f32 %v341_v27, %v1294_v20  ;;  %1126 = vtanh.f32 %v370_v33  ;;  %v335_v11 = vmul.f32 0.5, %v300_v25 }
  0xb9   :  { %v350_v32 = vmul.f32 %v342_v28, %v286_v21  ;;  %v351_v35 = vmul.f32 %v343_v30, %v300_v25  ;;  %1128 = vtanh.f32 %v371_v36  ;;  %v333_v5 = vmul.f32 0.5, %v1294_v20 }
  0xba   :  { %v356_v34 = vmul.f32 0.044715, %v348_v29  ;;  %v357_v37 = vmul.f32 0.044715, %v349_v31  ;;  %v735_v36 = vlaneseq }
  0xbb   :  { %v358_v38 = vmul.f32 0.044715, %v350_v32  ;;  %v313_v39 = vpop.f32.mrf.mxu2  ;;  %v359_v41 = vmul.f32 0.044715, %v351_v35  ;;  %v327_v43 = vpop.f32.mrf.mxu3 }
  0xbc   :  { %v364_v40 = vadd.f32 %v356_v34, %v1292_v17  ;;  %v314_v42 = vadd.f32 %v313_v39, %v102_v8  ;;  %v365_v44 = vadd.f32 %v357_v37, %v1294_v20  ;;  %v328_v46 = vadd.f32 %v327_v43, %v103_v12 }
  0xbd   :  { %v366_v45 = vadd.f32 %v358_v38, %v286_v21  ;;  %v367_v47 = vadd.f32 %v359_v41, %v300_v25  ;;  %v736_v37 = vshrl.u32 %v735_v36, 7  ;;  %v742_v38 = vand.u32 127, %v735_v36 }
  0xbe   :  { %v344_v48 = vmul.f32 %v314_v42, %v314_v42  ;;  %v345_v50 = vmul.f32 %v328_v46, %v328_v46  ;;  %v372_v51 = vmul.f32 0.7978846, %v364_v40  ;;  %v373_v54 = vmul.f32 0.7978846, %v365_v44  ;;  %v1127_v58 = vpop.eup %1126 }
  0xbf   :  { %v374_v49 = vmul.f32 0.7978846, %v366_v45  ;;  %v375_v52 = vmul.f32 0.7978846, %v367_v47  ;;  %v1129_v60 = vpop.eup %1128  ;;  %v386_v0 = vadd.f32 1.0, %v1127_v58  ;;  %v336_v21 = vmul.f32 0.5, %v314_v42 }
  0xc0   :  { %v352_v53 = vmul.f32 %v344_v48, %v314_v42  ;;  %v353_v55 = vmul.f32 %v345_v50, %v328_v46  ;;  %v387_v2 = vadd.f32 1.0, %v1129_v60  ;;  %v337_v25 = vmul.f32 0.5, %v328_v46  ;;  %v1125_v60 = vld [vmem:[%s1324_s5] ss:$0 sm:$0xff] }
  0xc1   :  { %1130 = vtanh.f32 %v374_v49  ;;  %v394_v14 = vmul.f32 %v386_v0, %v330_v6  ;;  %v743_v39 = vmul.u32 2654435761, %v736_v37  ;;  %v745_v17 = vmul.u32 2246822519, %v742_v38 }
  0xc2   :  { %v360_v56 = vmul.f32 0.044715, %v352_v53  ;;  %1132 = vtanh.f32 %v375_v52  ;;  %v361_v57 = vmul.f32 0.044715, %v353_v55  ;;  %v395_v16 = vmul.f32 %v387_v2, %v331_v10 }
  0xc3   :  { %1134 = vtanh.f32 %v372_v51  ;;  %v746_v20 = vadd.s32 %v745_v17, %v743_v39  ;;  %v737_v40 = vadd.s32 8, %v736_v37  ;;  %v748_v41 = vstv %s57_s13 }
  0xc4   :  { %v368_v59 = vadd.f32 %v360_v56, %v314_v42  ;;  %1136 = vtanh.f32 %v373_v54  ;;  %v369_v61 = vadd.f32 %v361_v57, %v328_v46 }
  0xc5   :  { %v749_v42 = vadd.s32 %v748_v41, %v746_v20  ;;  %v744_v43 = vmul.u32 2654435761, %v737_v40 }
  0xc6   :  { %v376_v62 = vmul.f32 0.7978846, %v368_v59  ;;  %v377_v63 = vmul.f32 0.7978846, %v369_v61 }
  0xc7   :  { %v1131_v1 = vpop.eup %1130  ;;  %v751_v44 = vshrl.u32 %v749_v42, 16  ;;  %v747_v45 = vadd.s32 %v745_v17, %v744_v43 }
  0xc8   :  { %1138 = vtanh.f32 %v376_v62  ;;  %v1133_v4 = vpop.eup %1132  ;;  %v390_v8 = vadd.f32 1.0, %v1131_v1 }
  0xc9   :  { %1140 = vtanh.f32 %v377_v63  ;;  %v1135_v9 = vpop.eup %1134  ;;  %v391_v12 = vadd.f32 1.0, %v1133_v4  ;;  %v753_v46 = vxor.u32 %v751_v44, %v749_v42  ;;  %v750_v47 = vadd.s32 %v748_v41, %v747_v45 }
  0xca   :  { %v1137_v13 = vpop.eup %1136  ;;  %v398_v15 = vmul.f32 %v390_v8, %v334_v7  ;;  %v388_v22 = vadd.f32 1.0, %v1135_v9 }
  0xcb   :  { %v399_v18 = vmul.f32 %v391_v12, %v335_v11  ;;  %v389_v26 = vadd.f32 1.0, %v1137_v13  ;;  %v755_v48 = vmul.u32 2146121005, %v753_v46  ;;  %v752_v49 = vshrl.u32 %v750_v47, 16 }
  0xcc   :  { %v404_v19 = vpack.c.bf16 %v398_v15, %v394_v14  ;;  %v396_v30 = vmul.f32 %v388_v22, %v332_v3 }
  0xcd   :  { %v405_v24 = vpack.c.bf16 %v399_v18, %v395_v16  ;;  %v397_v32 = vmul.f32 %v389_v26, %v333_v5  ;;  %v757_v52 = vshrl.u32 %v755_v48, 15  ;;  %v754_v53 = vxor.u32 %v752_v49, %v750_v47 }
  0xce   :  { %v1139_v23 = vpop.eup %1138  ;;  %672 = vmatmul.bf16.vlgmr.msrb.gmra.mxu0 %v404_v19 }
  0xcf   :  { %v1141_v27 = vpop.eup %1140  ;;  %v392_v28 = vadd.f32 1.0, %v1139_v23  ;;  %686 = vmatmul.bf16.vlgmr.msrb.gmra.mxu1 %v405_v24  ;;  %v759_v54 = vxor.u32 %v757_v52, %v755_v48  ;;  %v756_v55 = vmul.u32 2146121005, %v754_v53 }
  0xd0   :  { %v393_v29 = vadd.f32 1.0, %v1141_v27 }
  0xd1   :  { %v400_v31 = vmul.f32 %v392_v28, %v336_v21  ;;  %v761_v61 = vand.u32 1, %v759_v54  ;;  %v758_v62 = vshrl.u32 %v756_v55, 15 }
  0xd2   :  { %v401_v33 = vmul.f32 %v393_v29, %v337_v25 }
  0xd3   :  { %v406_v34 = vpack.c.bf16 %v400_v31, %v396_v30  ;;  %vm763_vm0 = vcmp.eq.s32.totalorder %v761_v61, 1  ;;  %v760_v4 = vxor.u32 %v758_v62, %v756_v55 }
  0xd4   :  { %v407_v35 = vpack.c.bf16 %v401_v33, %v397_v32 }
  0xd5   :  { %700 = vmatmul.bf16.vlgmr.msrb.gmra.mxu2 %v406_v34  ;;  %v762_v12 = vand.u32 1, %v760_v4 }
  0xd6   :  { %714 = vmatmul.bf16.vlgmr.msrb.gmra.mxu3 %v407_v35 }
  0xd7   :  { %vm764_vm1 = vcmp.eq.s32.totalorder %v762_v12, 1 }
 0x14b   :  { %v673_v50 = vpop.f32.mrf.mxu0 }
 0x14c   :  { %v687_v51 = vpop.f32.mrf.mxu1 }
 0x14d   :  { %v688_v56 = vadd.f32 %v687_v51, %v673_v50 }
 0x153   :  { %v675_v0 = vpop.f32.mrf.mxu0 }
 0x154   :  { %v689_v1 = vpop.f32.mrf.mxu1 }
 0x155   :  { %v690_v6 = vadd.f32 %v689_v1, %v675_v0 }
 0x158   :  { %v701_v57 = vpop.f32.mrf.mxu2 }
 0x159   :  { %v702_v58 = vadd.f32 %v701_v57, %v688_v56  ;;  %v715_v59 = vpop.f32.mrf.mxu3 }
 0x15b   :  { %v716_v63 = vadd.f32 %v715_v59, %v702_v58 }
 0x15d   :  { %v733_v2 = vadd.f32 %v1125_v60, %v716_v63 }
 0x15f   :  { %v765_v7 = vmul.f32 2.0, %v733_v2 }
 0x160   :  { %v703_v8 = vpop.f32.mrf.mxu2 }
 0x161   :  { %v767_v9 = vsel %vm763_vm0, %v765_v7, 0.0  ;;  %v704_v10 = vadd.f32 %v703_v8, %v690_v6  ;;  %v717_v11 = vpop.f32.mrf.mxu3 }
 0x162   :  { %769 = vst [vmem:[#allocation10] sm:$0xff] %v767_v9 }
 0x163   :  { %v718_v13 = vadd.f32 %v717_v11, %v704_v10 }
 0x165   :  { %v734_v14 = vadd.f32 %v1125_v60, %v718_v13 }
 0x167   :  { %v766_v15 = vmul.f32 2.0, %v734_v14 }
 0x169   :  { %v768_v16 = vsel %vm764_vm1, %v766_v15, 0.0 }
 0x16a   :  { %770 = vst [vmem:[#allocation10 + $0x8] sm:$0xff] %v768_v16 }
 0x16b   :  { %783 = dma.vmem_to_hbm [thread:$0]  %s776_s16, 256, %s778_s18, [#allocation7], %s1227_s19, %s1227_s19, %s1228_s20  }
 0x16c   :  { %1218 = dma.done.wait [#allocation7], 256  }
 0x16d   :  { %1219 = vsyncadd [#allocation7], 4294967040 }
 0x16e   :  { %788 = vsyncpa [#allocation6], 1 }
 0x16f   :  { %789 = vsyncpa [#allocation9], 1 }
 0x170   :  { %790 = vsyncpa [#allocation7], 1 }

</bundles_post_ra>
